<compile_context>
chip_gen: v6e
topology: v6e:2x2x1
jax: 0.10.0
libtpu: 0.0.40
codegen_flags: <defaults>
</compile_context>

<pallas_src>
import jax
import jax.numpy as jnp
import numpy as np
from jax.experimental import pallas as pl
from jax.experimental.pallas import tpu as pltpu

DILATIONS = (4, 8, 16)


# ------------------------- static tap bookkeeping ----------------------------

def _live_taps(H, W, dilations):
    """Per-branch list of (ky, kx, dy, dx) taps whose offset can reach inside
    the image.  Dropped taps only ever read zero padding ('same' conv)."""
    live = []
    for d in dilations:
        taps = []
        for ky in range(3):
            for kx in range(3):
                dy, dx = (ky - 1) * d, (kx - 1) * d
                if abs(dy) < H and abs(dx) < W:
                    taps.append((ky, kx, dy, dx))
        live.append(taps)
    return live


# ------------------------------ fused kernel ---------------------------------

def _make_kernel(W, E, nlane, live):
    def kernel(x_ref, w1_ref, wbig_ref, mask_ref, o_ref, z_ref):
        # x_ref:    (Cin, L) bf16      folded batch images, pixels on lanes
        # w1_ref:   (E, Cin) bf16      1x1 conv weight (O, I)
        # wbig_ref: (R*E, E) bf16      live-tap (O, I) matrices, branch-major
        # mask_ref: (R, L)   f32       {0,1} validity mask per live tap
        # o_ref:    (4E, L)  f32       [fused, b1, b2, b3] stacked on channels
        # z_ref:    (9E, L)  f32       per-branch tap products (reused scratch)

        # 1x1 conv + ReLU; one bf16 copy feeds all tap matmuls.
        x_e = jnp.maximum(
            jnp.dot(w1_ref[...], x_ref[...], preferred_element_type=jnp.float32),
            0.0).astype(jnp.bfloat16)                              # (E, L)

        fused = jnp.zeros((E, nlane), jnp.float32)
        wrow = 0    # running row offset into wbig (units of E rows)
        mrow = 0    # running row offset into masks (one row per live tap)
        for bi, taps in enumerate(live):
            nb = len(taps)
            # All live taps of this branch in one MXU call; scratch reused.
            z_ref[0:nb * E, :] = jnp.dot(
                wbig_ref[wrow * E:(wrow + nb) * E, :], x_e,
                preferred_element_type=jnp.float32)                # (nb*E, L)

            acc = jnp.zeros((E, nlane), jnp.float32)
            for t, (ky, kx, dy, dx) in enumerate(taps):
                zt = z_ref[t * E:(t + 1) * E, :]                   # (E, L)
                off = dy * W + dx                                  # flat shift
                if off == 0:
                    acc = acc + zt                                 # always valid
                else:
                    # out[:, p] = zt[:, p + off]; wrapped lanes are zeroed by
                    # the precomputed mask row (1 mul + 1 add per tap).
                    zt = pltpu.roll(zt, shift=(-off) % nlane, axis=1)
                    acc = acc + zt * mask_ref[mrow + t:mrow + t + 1, :]
            b = jnp.maximum(acc, 0.0)
            o_ref[(bi + 1) * E:(bi + 2) * E, :] = b                # stream out
            fused = fused + b
            wrow += nb
            mrow += nb

        o_ref[0:E, :] = fused                                      # sum fusion

    return kernel


# --------------------------------- wrapper -----------------------------------

def inception_encoder(x_nchw, params, dilations=DILATIONS, batch_fold=None):
    """Forward pass of DINet's Inception_Encoder.  Input/output are NCHW."""
    w1, w2, w3, w4 = params
    B, Cin, H, W = x_nchw.shape
    E = int(w1.shape[0])
    n = H * W
    assert n % 128 == 0, "H*W must be a multiple of 128"
    assert E % 8 == 0, "embedding_size must be a multiple of 8"

    # Fold G batch images onto the lane axis per grid step (wider vregs,
    # fewer grid steps).  NOTE: on v7x you may pass batch_fold explicitly so
    # that B // batch_fold >= 2 and both TensorCores get work.
    if batch_fold is None:
        batch_fold = 1
        for g in range(1, B + 1):
            if B % g == 0 and g * n <= 2048:
                batch_fold = g
    g = batch_fold
    assert B % g == 0
    nlane = g * n
    n_steps = B // g

    live = _live_taps(H, W, dilations)
    total_live = sum(len(t) for t in live)
    max_live = max(len(t) for t in live)

    # ---- inputs / weights pre-cast to bf16 outside the kernel --------------
    x_fold = (x_nchw.astype(jnp.bfloat16)
              .reshape(n_steps, g, Cin, n)
              .transpose(0, 2, 1, 3)
              .reshape(n_steps, Cin, nlane))
    w1_mat = w1.reshape(E, Cin).astype(jnp.bfloat16)

    branch_w = (w2, w3, w4)
    rows = []
    for bi, taps in enumerate(live):
        wb = branch_w[bi]
        for (ky, kx, dy, dx) in taps:
            rows.append(wb[:, :, ky, kx])                  # (E, E) (O, I)
    wbig = jnp.concatenate(rows, axis=0).astype(jnp.bfloat16)   # (total_live*E, E)

    # ---- precomputed per-tap boundary masks (compile-time constants) -------
    pix = np.arange(n, dtype=np.int64)
    hh, ww = pix // W, pix % W
    mrows = []
    for bi, taps in enumerate(live):
        for (ky, kx, dy, dx) in taps:
            valid = ((hh + dy >= 0) & (hh + dy < H) &
                     (ww + dx >= 0) & (ww + dx < W))
            mrows.append(valid.astype(np.float32))
    masks = jnp.asarray(np.tile(np.stack(mrows, axis=0), (1, g)))  # (total_live, L)

    kernel = _make_kernel(W, E, nlane, live)

    # ---- advisory cost estimate + explicit VMEM budget ----------------------
    flops = 2 * B * n * (E * Cin + total_live * E * E) + 2 * B * n * total_live * E
    bytes_accessed = (x_fold.size * 2 + B * 4 * E * n * 4 +
                      n_steps * ((w1_mat.size + wbig.size) * 2 + masks.size * 4))
    est_vmem = (2 * (Cin * nlane * 2) + 2 * (E * Cin * 2) +
                2 * (total_live * E * E * 2) + 2 * (total_live * nlane * 4) +
                2 * (4 * E * nlane * 4) + (max_live * E * nlane * 4))
    vmem_limit = int(min(64 * 2**20, max(2 * est_vmem, 8 * 2**20)))

    out = pl.pallas_call(
        kernel,
        out_shape=jax.ShapeDtypeStruct((n_steps, 4 * E, nlane), jnp.float32),
        grid=(n_steps,),
        in_specs=[
            pl.BlockSpec((None, Cin, nlane), lambda b: (b, 0, 0)),     # x
            pl.BlockSpec((E, Cin), lambda b: (0, 0)),                  # w1
            pl.BlockSpec((total_live * E, E), lambda b: (0, 0)),       # tap weights
            pl.BlockSpec((total_live, nlane), lambda b: (0, 0)),       # tap masks
        ],
        out_specs=pl.BlockSpec((None, 4 * E, nlane), lambda b: (b, 0, 0)),
        scratch_shapes=[pltpu.VMEM((max_live * E, nlane), jnp.float32)],
        compiler_params=pltpu.CompilerParams(
            dimension_semantics=("parallel",),
            vmem_limit_bytes=vmem_limit),
        cost_estimate=pl.CostEstimate(
            flops=int(flops), transcendentals=0,
            bytes_accessed=int(bytes_accessed)),
    )(x_fold, w1_mat, wbig, masks)

    return (out.reshape(n_steps, 4 * E, g, n)
               .transpose(0, 2, 1, 3)
               .reshape(B, 4 * E, H, W))


# ---------------------------- reference (XLA) ---------------------------------

def reference_forward(x_nchw, params):
    w1, w2, w3, w4 = params

    def conv(x, w, d):
        return jax.lax.conv_general_dilated(
            x, w, window_strides=(1, 1), padding="SAME",
            rhs_dilation=(d, d),
            dimension_numbers=("NCHW", "OIHW", "NCHW"),
            precision=jax.lax.Precision.HIGHEST)

    x1 = jax.nn.relu(conv(x_nchw, w1, 1))
    b1 = jax.nn.relu(conv(x1, w2, 4))
    b2 = jax.nn.relu(conv(x1, w3, 8))
    b3 = jax.nn.relu(conv(x1, w4, 16))
    fused = b1 + b2 + b3
    return jnp.concatenate([fused, b1, b2, b3], axis=1)


# ----------------------------------- main --------------------------------------

if __name__ == "__main__":
    B, Cin, H, W = 2, 4, 16, 16          # input_size = 4
    E = 8                                # embedding_size = 8

    key = jax.random.PRNGKey(0)
    k_x, k1, k2, k3, k4 = jax.random.split(key, 5)

    x = jax.random.normal(k_x, (B, Cin, H, W), dtype=jnp.float32)

    # Deterministic synthetic weights (same shapes as the nn.Conv2d layers,
    # all bias=False as in the PyTorch module).
    w1 = 0.1 * jax.random.normal(k1, (E, Cin, 1, 1), dtype=jnp.float32)
    w2 = 0.1 * jax.random.normal(k2, (E, E, 3, 3), dtype=jnp.float32)
    w3 = 0.1 * jax.random.normal(k3, (E, E, 3, 3), dtype=jnp.float32)
    w4 = 0.1 * jax.random.normal(k4, (E, E, 3, 3), dtype=jnp.float32)
    params = (w1, w2, w3, w4)

    fwd = jax.jit(inception_encoder)
    out = jax.block_until_ready(fwd(x, params))
    assert out.shape == (B, 4 * E, H, W), out.shape

    ref = jax.block_until_ready(reference_forward(x, params))
    # bf16 MXU inputs with f32 accumulation (x and x_e rounded to bf16):
    # worst-case rounding error is ~1e-2 absolute; structural bugs (tap order,
    # shift direction, mask, weight reshape) would be O(0.1+).
    np.testing.assert_allclose(np.asarray(out), np.asarray(ref),
                               rtol=2e-2, atol=2e-2)

    print("KERNEL_OK")
</pallas_src>

<mosaic_0001>
module attributes {stable_mosaic.version = 11 : i64} {
  func.func @kernel(%arg0: i32, %arg1: memref<1x4x512xbf16, #tpu.memory_space<vmem>>, %arg2: memref<8x4xbf16, #tpu.memory_space<vmem>>, %arg3: memref<152x8xbf16, #tpu.memory_space<vmem>>, %arg4: memref<19x512xf32, #tpu.memory_space<vmem>>, %arg5: memref<1x32x512xf32, #tpu.memory_space<vmem>>, %arg6: memref<72x512xf32, #tpu.memory_space<vmem>>) attributes {dimension_semantics = [#tpu.dimension_semantics<parallel>], iteration_bounds = array<i64: 1>, scalar_prefetch = 0 : i64, scratch_operands = 1 : i64, tpu.core_type = #tpu.core_type<tc>, window_params = [{transform_indices = @transform_0, window_bounds = array<i64: 1, 4, 512>}, {pipeline_mode = #tpu.pipeline_mode<synchronous>, transform_indices = @transform_1, window_bounds = array<i64: 8, 4>}, {pipeline_mode = #tpu.pipeline_mode<synchronous>, transform_indices = @transform_2, window_bounds = array<i64: 152, 8>}, {pipeline_mode = #tpu.pipeline_mode<synchronous>, transform_indices = @transform_3, window_bounds = array<i64: 19, 512>}, {transform_indices = @transform_4, window_bounds = array<i64: 1, 32, 512>}]} {
    %c0 = arith.constant 0 : index
    %c0_0 = arith.constant 0 : index
    %0 = vector.load %arg2[%c0, %c0_0] : memref<8x4xbf16, #tpu.memory_space<vmem>>, vector<8x4xbf16>
    %c0_1 = arith.constant 0 : index
    %c0_2 = arith.constant 0 : index
    %c0_3 = arith.constant 0 : index
    %1 = vector.load %arg1[%c0_1, %c0_2, %c0_3] : memref<1x4x512xbf16, #tpu.memory_space<vmem>>, vector<1x4x512xbf16>
    %2 = vector.shape_cast %1 : vector<1x4x512xbf16> to vector<4x512xbf16>
    %cst = arith.constant dense<0.000000e+00> : vector<8x512xf32>
    %3 = tpu.matmul %0, %2, %cst {dimension_numbers = #tpu.dot_dimension_numbers<[1], [0], [0], [1], [0, 0, 1, 1], [], []>} : vector<8x4xbf16>, vector<4x512xbf16>, vector<8x512xf32> -> vector<8x512xf32>
    %cst_4 = arith.constant 0.000000e+00 : f32
    %4 = vector.broadcast %cst_4 : f32 to vector<8x512xf32>
    %5 = arith.maximumf %3, %4 : vector<8x512xf32>
    %6 = arith.truncf %5 : vector<8x512xf32> to vector<8x512xbf16>
    %cst_5 = arith.constant 0.000000e+00 : f32
    %7 = vector.broadcast %cst_5 : f32 to vector<8x512xf32>
    %c0_6 = arith.constant 0 : index
    %c0_7 = arith.constant 0 : index
    %8 = vector.load %arg3[%c0_6, %c0_7] : memref<152x8xbf16, #tpu.memory_space<vmem>>, vector<72x8xbf16>
    %cst_8 = arith.constant dense<0.000000e+00> : vector<72x512xf32>
    %9 = tpu.matmul %8, %6, %cst_8 {dimension_numbers = #tpu.dot_dimension_numbers<[1], [0], [0], [1], [0, 0, 1, 1], [], []>} : vector<72x8xbf16>, vector<8x512xbf16>, vector<72x512xf32> -> vector<72x512xf32>
    %c0_9 = arith.constant 0 : index
    %c0_10 = arith.constant 0 : index
    %10 = vector.load %arg6[%c0_9, %c0_10] : memref<72x512xf32, #tpu.memory_space<vmem>>, vector<72x512xf32>
    tpu.vector_store %arg6[%c0_9, %c0_10], %9 {strides = array<i32>} : memref<72x512xf32, #tpu.memory_space<vmem>>, vector<72x512xf32>,
    %cst_11 = arith.constant 0.000000e+00 : f32
    %11 = vector.broadcast %cst_11 : f32 to vector<8x512xf32>
    %c0_12 = arith.constant 0 : index
    %c0_13 = arith.constant 0 : index
    %12 = vector.load %arg6[%c0_12, %c0_13] : memref<72x512xf32, #tpu.memory_space<vmem>>, vector<8x512xf32>
    %c68_i32 = arith.constant 68 : i32
    %13 = tpu.dynamic_rotate %12 by %c68_i32 dim 1 : vector<8x512xf32>, i32 -> vector<8x512xf32>
    %c0_14 = arith.constant 0 : index
    %c0_15 = arith.constant 0 : index
    %14 = vector.load %arg4[%c0_14, %c0_15] : memref<19x512xf32, #tpu.memory_space<vmem>>, vector<1x512xf32>
    %15 = vector.broadcast %14 : vector<1x512xf32> to vector<8x512xf32>
    %16 = arith.mulf %13, %15 : vector<8x512xf32>
    %17 = arith.addf %11, %16 : vector<8x512xf32>
    %c8 = arith.constant 8 : index
    %c0_16 = arith.constant 0 : index
    %18 = vector.load %arg6[%c8, %c0_16] : memref<72x512xf32, #tpu.memory_space<vmem>>, vector<8x512xf32>
    %c64_i32 = arith.constant 64 : i32
    %19 = tpu.dynamic_rotate %18 by %c64_i32 dim 1 : vector<8x512xf32>, i32 -> vector<8x512xf32>
    %c1 = arith.constant 1 : index
    %c0_17 = arith.constant 0 : index
    %20 = vector.load %arg4[%c1, %c0_17] : memref<19x512xf32, #tpu.memory_space<vmem>>, vector<1x512xf32>
    %21 = vector.broadcast %20 : vector<1x512xf32> to vector<8x512xf32>
    %22 = arith.mulf %19, %21 : vector<8x512xf32>
    %23 = arith.addf %17, %22 : vector<8x512xf32>
    %c16 = arith.constant 16 : index
    %c0_18 = arith.constant 0 : index
    %24 = vector.load %arg6[%c16, %c0_18] : memref<72x512xf32, #tpu.memory_space<vmem>>, vector<8x512xf32>
    %c60_i32 = arith.constant 60 : i32
    %25 = tpu.dynamic_rotate %24 by %c60_i32 dim 1 : vector<8x512xf32>, i32 -> vector<8x512xf32>
    %c2 = arith.constant 2 : index
    %c0_19 = arith.constant 0 : index
    %26 = vector.load %arg4[%c2, %c0_19] : memref<19x512xf32, #tpu.memory_space<vmem>>, vector<1x512xf32>
    %27 = vector.broadcast %26 : vector<1x512xf32> to vector<8x512xf32>
    %28 = arith.mulf %25, %27 : vector<8x512xf32>
    %29 = arith.addf %23, %28 : vector<8x512xf32>
    %c24 = arith.constant 24 : index
    %c0_20 = arith.constant 0 : index
    %30 = vector.load %arg6[%c24, %c0_20] : memref<72x512xf32, #tpu.memory_space<vmem>>, vector<8x512xf32>
    %c4_i32 = arith.constant 4 : i32
    %31 = tpu.dynamic_rotate %30 by %c4_i32 dim 1 : vector<8x512xf32>, i32 -> vector<8x512xf32>
    %c3 = arith.constant 3 : index
    %c0_21 = arith.constant 0 : index
    %32 = vector.load %arg4[%c3, %c0_21] : memref<19x512xf32, #tpu.memory_space<vmem>>, vector<1x512xf32>
    %33 = vector.broadcast %32 : vector<1x512xf32> to vector<8x512xf32>
    %34 = arith.mulf %31, %33 : vector<8x512xf32>
    %35 = arith.addf %29, %34 : vector<8x512xf32>
    %c32 = arith.constant 32 : index
    %c0_22 = arith.constant 0 : index
    %36 = vector.load %arg6[%c32, %c0_22] : memref<72x512xf32, #tpu.memory_space<vmem>>, vector<8x512xf32>
    %37 = arith.addf %35, %36 : vector<8x512xf32>
    %c40 = arith.constant 40 : index
    %c0_23 = arith.constant 0 : index
    %38 = vector.load %arg6[%c40, %c0_23] : memref<72x512xf32, #tpu.memory_space<vmem>>, vector<8x512xf32>
    %c508_i32 = arith.constant 508 : i32
    %39 = tpu.dynamic_rotate %38 by %c508_i32 dim 1 : vector<8x512xf32>, i32 -> vector<8x512xf32>
    %c5 = arith.constant 5 : index
    %c0_24 = arith.constant 0 : index
    %40 = vector.load %arg4[%c5, %c0_24] : memref<19x512xf32, #tpu.memory_space<vmem>>, vector<1x512xf32>
    %41 = vector.broadcast %40 : vector<1x512xf32> to vector<8x512xf32>
    %42 = arith.mulf %39, %41 : vector<8x512xf32>
    %43 = arith.addf %37, %42 : vector<8x512xf32>
    %c48 = arith.constant 48 : index
    %c0_25 = arith.constant 0 : index
    %44 = vector.load %arg6[%c48, %c0_25] : memref<72x512xf32, #tpu.memory_space<vmem>>, vector<8x512xf32>
    %c452_i32 = arith.constant 452 : i32
    %45 = tpu.dynamic_rotate %44 by %c452_i32 dim 1 : vector<8x512xf32>, i32 -> vector<8x512xf32>
    %c6 = arith.constant 6 : index
    %c0_26 = arith.constant 0 : index
    %46 = vector.load %arg4[%c6, %c0_26] : memref<19x512xf32, #tpu.memory_space<vmem>>, vector<1x512xf32>
    %47 = vector.broadcast %46 : vector<1x512xf32> to vector<8x512xf32>
    %48 = arith.mulf %45, %47 : vector<8x512xf32>
    %49 = arith.addf %43, %48 : vector<8x512xf32>
    %c56 = arith.constant 56 : index
    %c0_27 = arith.constant 0 : index
    %50 = vector.load %arg6[%c56, %c0_27] : memref<72x512xf32, #tpu.memory_space<vmem>>, vector<8x512xf32>
    %c448_i32 = arith.constant 448 : i32
    %51 = tpu.dynamic_rotate %50 by %c448_i32 dim 1 : vector<8x512xf32>, i32 -> vector<8x512xf32>
    %c7 = arith.constant 7 : index
    %c0_28 = arith.constant 0 : index
    %52 = vector.load %arg4[%c7, %c0_28] : memref<19x512xf32, #tpu.memory_space<vmem>>, vector<1x512xf32>
    %53 = vector.broadcast %52 : vector<1x512xf32> to vector<8x512xf32>
    %54 = arith.mulf %51, %53 : vector<8x512xf32>
    %55 = arith.addf %49, %54 : vector<8x512xf32>
    %c64 = arith.constant 64 : index
    %c0_29 = arith.constant 0 : index
    %56 = vector.load %arg6[%c64, %c0_29] : memref<72x512xf32, #tpu.memory_space<vmem>>, vector<8x512xf32>
    %c444_i32 = arith.constant 444 : i32
    %57 = tpu.dynamic_rotate %56 by %c444_i32 dim 1 : vector<8x512xf32>, i32 -> vector<8x512xf32>
    %c8_30 = arith.constant 8 : index
    %c0_31 = arith.constant 0 : index
    %58 = vector.load %arg4[%c8_30, %c0_31] : memref<19x512xf32, #tpu.memory_space<vmem>>, vector<1x512xf32>
    %59 = vector.broadcast %58 : vector<1x512xf32> to vector<8x512xf32>
    %60 = arith.mulf %57, %59 : vector<8x512xf32>
    %61 = arith.addf %55, %60 : vector<8x512xf32>
    %cst_32 = arith.constant 0.000000e+00 : f32
    %62 = vector.broadcast %cst_32 : f32 to vector<8x512xf32>
    %63 = arith.maximumf %61, %62 : vector<8x512xf32>
    %c0_33 = arith.constant 0 : index
    %c8_34 = arith.constant 8 : index
    %c0_35 = arith.constant 0 : index
    %64 = vector.load %arg5[%c0_33, %c8_34, %c0_35] : memref<1x32x512xf32, #tpu.memory_space<vmem>>, vector<1x8x512xf32>
    %65 = vector.shape_cast %64 : vector<1x8x512xf32> to vector<8x512xf32>
    %66 = vector.shape_cast %63 : vector<8x512xf32> to vector<1x8x512xf32>
    tpu.vector_store %arg5[%c0_33, %c8_34, %c0_35], %66 {strides = array<i32>} : memref<1x32x512xf32, #tpu.memory_space<vmem>>, vector<1x8x512xf32>,
    %67 = arith.addf %7, %63 : vector<8x512xf32>
    %c72 = arith.constant 72 : index
    %c0_36 = arith.constant 0 : index
    %68 = vector.load %arg3[%c72, %c0_36] : memref<152x8xbf16, #tpu.memory_space<vmem>>, vector<72x8xbf16>
    %cst_37 = arith.constant dense<0.000000e+00> : vector<72x512xf32>
    %69 = tpu.matmul %68, %6, %cst_37 {dimension_numbers = #tpu.dot_dimension_numbers<[1], [0], [0], [1], [0, 0, 1, 1], [], []>} : vector<72x8xbf16>, vector<8x512xbf16>, vector<72x512xf32> -> vector<72x512xf32>
    %c0_38 = arith.constant 0 : index
    %c0_39 = arith.constant 0 : index
    %70 = vector.load %arg6[%c0_38, %c0_39] : memref<72x512xf32, #tpu.memory_space<vmem>>, vector<72x512xf32>
    tpu.vector_store %arg6[%c0_38, %c0_39], %69 {strides = array<i32>} : memref<72x512xf32, #tpu.memory_space<vmem>>, vector<72x512xf32>,
    %cst_40 = arith.constant 0.000000e+00 : f32
    %71 = vector.broadcast %cst_40 : f32 to vector<8x512xf32>
    %c0_41 = arith.constant 0 : index
    %c0_42 = arith.constant 0 : index
    %72 = vector.load %arg6[%c0_41, %c0_42] : memref<72x512xf32, #tpu.memory_space<vmem>>, vector<8x512xf32>
    %c136_i32 = arith.constant 136 : i32
    %73 = tpu.dynamic_rotate %72 by %c136_i32 dim 1 : vector<8x512xf32>, i32 -> vector<8x512xf32>
    %c9 = arith.constant 9 : index
    %c0_43 = arith.constant 0 : index
    %74 = vector.load %arg4[%c9, %c0_43] : memref<19x512xf32, #tpu.memory_space<vmem>>, vector<1x512xf32>
    %75 = vector.broadcast %74 : vector<1x512xf32> to vector<8x512xf32>
    %76 = arith.mulf %73, %75 : vector<8x512xf32>
    %77 = arith.addf %71, %76 : vector<8x512xf32>
    %c8_44 = arith.constant 8 : index
    %c0_45 = arith.constant 0 : index
    %78 = vector.load %arg6[%c8_44, %c0_45] : memref<72x512xf32, #tpu.memory_space<vmem>>, vector<8x512xf32>
    %c128_i32 = arith.constant 128 : i32
    %79 = tpu.dynamic_rotate %78 by %c128_i32 dim 1 : vector<8x512xf32>, i32 -> vector<8x512xf32>
    %c10 = arith.constant 10 : index
    %c0_46 = arith.constant 0 : index
    %80 = vector.load %arg4[%c10, %c0_46] : memref<19x512xf32, #tpu.memory_space<vmem>>, vector<1x512xf32>
    %81 = vector.broadcast %80 : vector<1x512xf32> to vector<8x512xf32>
    %82 = arith.mulf %79, %81 : vector<8x512xf32>
    %83 = arith.addf %77, %82 : vector<8x512xf32>
    %c16_47 = arith.constant 16 : index
    %c0_48 = arith.constant 0 : index
    %84 = vector.load %arg6[%c16_47, %c0_48] : memref<72x512xf32, #tpu.memory_space<vmem>>, vector<8x512xf32>
    %c120_i32 = arith.constant 120 : i32
    %85 = tpu.dynamic_rotate %84 by %c120_i32 dim 1 : vector<8x512xf32>, i32 -> vector<8x512xf32>
    %c11 = arith.constant 11 : index
    %c0_49 = arith.constant 0 : index
    %86 = vector.load %arg4[%c11, %c0_49] : memref<19x512xf32, #tpu.memory_space<vmem>>, vector<1x512xf32>
    %87 = vector.broadcast %86 : vector<1x512xf32> to vector<8x512xf32>
    %88 = arith.mulf %85, %87 : vector<8x512xf32>
    %89 = arith.addf %83, %88 : vector<8x512xf32>
    %c24_50 = arith.constant 24 : index
    %c0_51 = arith.constant 0 : index
    %90 = vector.load %arg6[%c24_50, %c0_51] : memref<72x512xf32, #tpu.memory_space<vmem>>, vector<8x512xf32>
    %c8_i32 = arith.constant 8 : i32
    %91 = tpu.dynamic_rotate %90 by %c8_i32 dim 1 : vector<8x512xf32>, i32 -> vector<8x512xf32>
    %c12 = arith.constant 12 : index
    %c0_52 = arith.constant 0 : index
    %92 = vector.load %arg4[%c12, %c0_52] : memref<19x512xf32, #tpu.memory_space<vmem>>, vector<1x512xf32>
    %93 = vector.broadcast %92 : vector<1x512xf32> to vector<8x512xf32>
    %94 = arith.mulf %91, %93 : vector<8x512xf32>
    %95 = arith.addf %89, %94 : vector<8x512xf32>
    %c32_53 = arith.constant 32 : index
    %c0_54 = arith.constant 0 : index
    %96 = vector.load %arg6[%c32_53, %c0_54] : memref<72x512xf32, #tpu.memory_space<vmem>>, vector<8x512xf32>
    %97 = arith.addf %95, %96 : vector<8x512xf32>
    %c40_55 = arith.constant 40 : index
    %c0_56 = arith.constant 0 : index
    %98 = vector.load %arg6[%c40_55, %c0_56] : memref<72x512xf32, #tpu.memory_space<vmem>>, vector<8x512xf32>
    %c504_i32 = arith.constant 504 : i32
    %99 = tpu.dynamic_rotate %98 by %c504_i32 dim 1 : vector<8x512xf32>, i32 -> vector<8x512xf32>
    %c14 = arith.constant 14 : index
    %c0_57 = arith.constant 0 : index
    %100 = vector.load %arg4[%c14, %c0_57] : memref<19x512xf32, #tpu.memory_space<vmem>>, vector<1x512xf32>
    %101 = vector.broadcast %100 : vector<1x512xf32> to vector<8x512xf32>
    %102 = arith.mulf %99, %101 : vector<8x512xf32>
    %103 = arith.addf %97, %102 : vector<8x512xf32>
    %c48_58 = arith.constant 48 : index
    %c0_59 = arith.constant 0 : index
    %104 = vector.load %arg6[%c48_58, %c0_59] : memref<72x512xf32, #tpu.memory_space<vmem>>, vector<8x512xf32>
    %c392_i32 = arith.constant 392 : i32
    %105 = tpu.dynamic_rotate %104 by %c392_i32 dim 1 : vector<8x512xf32>, i32 -> vector<8x512xf32>
    %c15 = arith.constant 15 : index
    %c0_60 = arith.constant 0 : index
    %106 = vector.load %arg4[%c15, %c0_60] : memref<19x512xf32, #tpu.memory_space<vmem>>, vector<1x512xf32>
    %107 = vector.broadcast %106 : vector<1x512xf32> to vector<8x512xf32>
    %108 = arith.mulf %105, %107 : vector<8x512xf32>
    %109 = arith.addf %103, %108 : vector<8x512xf32>
    %c56_61 = arith.constant 56 : index
    %c0_62 = arith.constant 0 : index
    %110 = vector.load %arg6[%c56_61, %c0_62] : memref<72x512xf32, #tpu.memory_space<vmem>>, vector<8x512xf32>
    %c384_i32 = arith.constant 384 : i32
    %111 = tpu.dynamic_rotate %110 by %c384_i32 dim 1 : vector<8x512xf32>, i32 -> vector<8x512xf32>
    %c16_63 = arith.constant 16 : index
    %c0_64 = arith.constant 0 : index
    %112 = vector.load %arg4[%c16_63, %c0_64] : memref<19x512xf32, #tpu.memory_space<vmem>>, vector<1x512xf32>
    %113 = vector.broadcast %112 : vector<1x512xf32> to vector<8x512xf32>
    %114 = arith.mulf %111, %113 : vector<8x512xf32>
    %115 = arith.addf %109, %114 : vector<8x512xf32>
    %c64_65 = arith.constant 64 : index
    %c0_66 = arith.constant 0 : index
    %116 = vector.load %arg6[%c64_65, %c0_66] : memref<72x512xf32, #tpu.memory_space<vmem>>, vector<8x512xf32>
    %c376_i32 = arith.constant 376 : i32
    %117 = tpu.dynamic_rotate %116 by %c376_i32 dim 1 : vector<8x512xf32>, i32 -> vector<8x512xf32>
    %c17 = arith.constant 17 : index
    %c0_67 = arith.constant 0 : index
    %118 = vector.load %arg4[%c17, %c0_67] : memref<19x512xf32, #tpu.memory_space<vmem>>, vector<1x512xf32>
    %119 = vector.broadcast %118 : vector<1x512xf32> to vector<8x512xf32>
    %120 = arith.mulf %117, %119 : vector<8x512xf32>
    %121 = arith.addf %115, %120 : vector<8x512xf32>
    %cst_68 = arith.constant 0.000000e+00 : f32
    %122 = vector.broadcast %cst_68 : f32 to vector<8x512xf32>
    %123 = arith.maximumf %121, %122 : vector<8x512xf32>
    %c0_69 = arith.constant 0 : index
    %c16_70 = arith.constant 16 : index
    %c0_71 = arith.constant 0 : index
    %124 = vector.load %arg5[%c0_69, %c16_70, %c0_71] : memref<1x32x512xf32, #tpu.memory_space<vmem>>, vector<1x8x512xf32>
    %125 = vector.shape_cast %124 : vector<1x8x512xf32> to vector<8x512xf32>
    %126 = vector.shape_cast %123 : vector<8x512xf32> to vector<1x8x512xf32>
    tpu.vector_store %arg5[%c0_69, %c16_70, %c0_71], %126 {strides = array<i32>} : memref<1x32x512xf32, #tpu.memory_space<vmem>>, vector<1x8x512xf32>,
    %127 = arith.addf %67, %123 : vector<8x512xf32>
    %c144 = arith.constant 144 : index
    %c0_72 = arith.constant 0 : index
    %128 = vector.load %arg3[%c144, %c0_72] : memref<152x8xbf16, #tpu.memory_space<vmem>>, vector<8x8xbf16>
    %cst_73 = arith.constant dense<0.000000e+00> : vector<8x512xf32>
    %129 = tpu.matmul %128, %6, %cst_73 {dimension_numbers = #tpu.dot_dimension_numbers<[1], [0], [0], [1], [0, 0, 1, 1], [], []>} : vector<8x8xbf16>, vector<8x512xbf16>, vector<8x512xf32> -> vector<8x512xf32>
    %c0_74 = arith.constant 0 : index
    %c0_75 = arith.constant 0 : index
    %130 = vector.load %arg6[%c0_74, %c0_75] : memref<72x512xf32, #tpu.memory_space<vmem>>, vector<8x512xf32>
    tpu.vector_store %arg6[%c0_74, %c0_75], %129 {strides = array<i32>} : memref<72x512xf32, #tpu.memory_space<vmem>>, vector<8x512xf32>,
    %cst_76 = arith.constant 0.000000e+00 : f32
    %131 = vector.broadcast %cst_76 : f32 to vector<8x512xf32>
    %c0_77 = arith.constant 0 : index
    %c0_78 = arith.constant 0 : index
    %132 = vector.load %arg6[%c0_77, %c0_78] : memref<72x512xf32, #tpu.memory_space<vmem>>, vector<8x512xf32>
    %133 = arith.addf %131, %132 : vector<8x512xf32>
    %cst_79 = arith.constant 0.000000e+00 : f32
    %134 = vector.broadcast %cst_79 : f32 to vector<8x512xf32>
    %135 = arith.maximumf %133, %134 : vector<8x512xf32>
    %c0_80 = arith.constant 0 : index
    %c24_81 = arith.constant 24 : index
    %c0_82 = arith.constant 0 : index
    %136 = vector.load %arg5[%c0_80, %c24_81, %c0_82] : memref<1x32x512xf32, #tpu.memory_space<vmem>>, vector<1x8x512xf32>
    %137 = vector.shape_cast %136 : vector<1x8x512xf32> to vector<8x512xf32>
    %138 = vector.shape_cast %135 : vector<8x512xf32> to vector<1x8x512xf32>
    tpu.vector_store %arg5[%c0_80, %c24_81, %c0_82], %138 {strides = array<i32>} : memref<1x32x512xf32, #tpu.memory_space<vmem>>, vector<1x8x512xf32>,
    %139 = arith.addf %127, %135 : vector<8x512xf32>
    %c0_83 = arith.constant 0 : index
    %c0_84 = arith.constant 0 : index
    %c0_85 = arith.constant 0 : index
    %140 = vector.load %arg5[%c0_83, %c0_84, %c0_85] : memref<1x32x512xf32, #tpu.memory_space<vmem>>, vector<1x8x512xf32>
    %141 = vector.shape_cast %140 : vector<1x8x512xf32> to vector<8x512xf32>
    %142 = vector.shape_cast %139 : vector<8x512xf32> to vector<1x8x512xf32>
    tpu.vector_store %arg5[%c0_83, %c0_84, %c0_85], %142 {strides = array<i32>} : memref<1x32x512xf32, #tpu.memory_space<vmem>>, vector<1x8x512xf32>,
    return
  }
  func.func @transform_0(%arg0: i32) -> (i32, i32, i32) {
    %c0_i32 = arith.constant 0 : i32
    %c0_i32_0 = arith.constant 0 : i32
    %c0_i32_1 = arith.constant 0 : i32
    return %arg0, %c0_i32, %c0_i32_0 : i32, i32, i32
  }
  func.func @transform_1(%arg0: i32) -> (i32, i32) {
    %c0_i32 = arith.constant 0 : i32
    %c0_i32_0 = arith.constant 0 : i32
    %c0_i32_1 = arith.constant 0 : i32
    return %c0_i32, %c0_i32_0 : i32, i32
  }
  func.func @transform_2(%arg0: i32) -> (i32, i32) {
    %c0_i32 = arith.constant 0 : i32
    %c0_i32_0 = arith.constant 0 : i32
    %c0_i32_1 = arith.constant 0 : i32
    return %c0_i32, %c0_i32_0 : i32, i32
  }
  func.func @transform_3(%arg0: i32) -> (i32, i32) {
    %c0_i32 = arith.constant 0 : i32
    %c0_i32_0 = arith.constant 0 : i32
    %c0_i32_1 = arith.constant 0 : i32
    return %c0_i32, %c0_i32_0 : i32, i32
  }
  func.func @transform_4(%arg0: i32) -> (i32, i32, i32) {
    %c0_i32 = arith.constant 0 : i32
    %c0_i32_0 = arith.constant 0 : i32
    %c0_i32_1 = arith.constant 0 : i32
    return %arg0, %c0_i32, %c0_i32_0 : i32, i32, i32
  }
}

</mosaic_0001>

<bundles_post_ra>
// kernel: inception_encoder.1
= control target key start
LH: loop header
LB: loop body
LE: loop exit
PB: predicated region body
PF: predicated region fallthrough
CT: control target
= control target key end

     0   :  { %v25_v0 = vlaneseq  ;;  %v1620_v2 = vmov 1983009808   ;;  %v1621_v4 = vmov 0   ;;  %vm42_vm0 = vcmask 1041408   ;;  %s1622_s13 = smov 68   ;;  %s1624_s14 = smov 60   ;;  %s2241_s0 = inlined_call_operand.vmem [shape: bf16[1,4,512], index: 0, kind: input, shape index: {}]   ;;  %s2242_s1 = inlined_call_operand.vmem [shape: bf16[8,4], index: 1, kind: input, shape index: {}]   ;;  %s2243_s2 = inlined_call_operand.vmem [shape: bf16[152,8], index: 2, kind: input, shape index: {}]   ;;  %s2244_s3 = inlined_call_operand.vmem [shape: f32[19,512], index: 3, kind: input, shape index: {}]   ;;  %s2245_s4 = inlined_call_operand.vmem [shape: f32[1,32,512], index: 4, kind: output, shape index: {}]  }
   0x1   :  { %v19_v1 = vld [vmem:[%s2241_s0] sm:$0xff]  ;;  %v23_v3 = vunpack.c.l.s4 %v1620_v2  ;;  %87 = vmatprep.mubr.bf16.mxu0 %v1621_v4  ;;  %128 = vmatprep.mubr.bf16.mxu1 %v1621_v4  ;;  %vm38_vm1 = vcmask 31744   ;;  %vm193_vm2 = vcmask 1043456   ;;  %vm177_vm3 = vcmask 64512   ;;  %v1611_v35 = vld [vmem:[%s2243_s2 + $0x8] sm:$0xff]   ;;  %v1612_v36 = vld [vmem:[%s2243_s2 + $0x10] sm:$0xff]  }
   0x2   :  { %v1660_v5 = vshrl.u32 %v25_v0, 7  ;;  %v21_v7 = vcombine.high %v19_v1, %v19_v1  ;;  %v18_v15 = vld [vmem:[%s2242_s1] sm:$0xf]  ;;  %v1613_v37 = vld [vmem:[%s2243_s2 + $0x18] sm:$0xff]   ;;  %v1615_v39 = vld [vmem:[%s2243_s2 + $0x24] sm:$0xff]   ;;  %s1625_s15 = smov 4  }
   0x3   :  { %v24_v6 = vunpack.c.0.s8 %v23_v3  ;;  %v1610_v34 = vld [vmem:[%s2243_s2] sm:$0xff]   ;;  %v1616_v40 = vld [vmem:[%s2243_s2 + $0x2c] sm:$0xff]   ;;  %v1617_v41 = vld [vmem:[%s2243_s2 + $0x34] sm:$0xff]   ;;  %s1626_s16 = smov 124   ;;  %s1627_s19 = smov 8  }
   0x4   :  { %v1614_v38 = vld [vmem:[%s2243_s2 + $0x20] ss:$0 sps:$4 sm:$0xff]   ;;  %v1619_v43 = vld [vmem:[%s2243_s2 + $0x44] ss:$0 sps:$4 sm:$0xff]   ;;  %v1425_v44 = vld [vmem:[%s2243_s2 + $0x48] sm:$0xf] }
   0x5   :  { %v27_v8 = vsub.s32 %v24_v6, %v1660_v5  ;;  %v1618_v42 = vld [vmem:[%s2243_s2 + $0x3c] sm:$0xff]   ;;  %s1623_s2 = smov 64   ;;  %s1628_s20 = smov 120  }
   0x7   :  { %v28_v9 = vrot.slane %v19_v1, %v27_v8  ;;  %v35_v10 = vrot.slane %v21_v7, %v27_v8 }
   0x9   :  { %v36_v11 = vcombine.high %v28_v9, %v28_v9  ;;  %v37_v12 = vcombine.high %v35_v10, %v35_v10  ;;  %v44_v13 = vsel %vm42_vm0, %v28_v9, 0  ;;  %v50_v14 = vsel %vm42_vm0, %v35_v10, 0 }
   0xb   :  { %1543 = vmatprep.subr.msk.bf16.mxu0 %vm42_vm0, %v36_v11  ;;  %1545 = vmatprep.subr.msk.bf16.mxu1 %vm42_vm0, %v37_v12 }
   0xc   :  { %70 = vmatpush1.bf16.msra.mxu0 %v44_v13  ;;  %111 = vmatpush1.bf16.msra.mxu1 %v50_v14 }
   0xf   :  { %1544 = vmatmul.mubr.msk.bf16.vlgmr.msra.gmra.mxu0 %vm38_vm1, %v18_v15  ;;  %1546 = vmatmul.mubr.msk.bf16.vlgmr.msra.gmra.mxu1 %vm38_vm1, %v18_v15 }
  0x10   :  { %238 = vmatprep.mubr.bf16.mxu0 %v1621_v4  ;;  %319 = vmatprep.mubr.bf16.mxu1 %v1621_v4 }
  0xcf   :  { %v89_v16 = vpop.f32.mrf.mxu0  ;;  %v130_v17 = vpop.f32.mrf.mxu1 }
  0xd0   :  { %v137_v18 = vmax.f32 %v89_v16, 0.0  ;;  %v139_v19 = vmax.f32 %v130_v17, 0.0 }
  0xd1   :  { %v91_v20 = vpop.f32.mrf.mxu0  ;;  %v132_v21 = vpop.f32.mrf.mxu1 }
  0xd2   :  { %v141_v22 = vpack.c.bf16 %v137_v18, %v137_v18  ;;  %v143_v23 = vpack.c.bf16 %v139_v19, %v139_v19  ;;  %v138_v24 = vmax.f32 %v91_v20, 0.0  ;;  %v140_v25 = vmax.f32 %v132_v21, 0.0 }
  0xd3   :  { %v93_v26 = vpop.f32.mrf.mxu0  ;;  %v134_v27 = vpop.f32.mrf.mxu1  ;;  %v1772_v21 = vsub.s32 1, %v1660_v5 }
  0xd4   :  { %v142_v28 = vpack.c.bf16 %v138_v24, %v138_v24  ;;  %v144_v29 = vpack.c.bf16 %v140_v25, %v140_v25  ;;  %v195_v32 = vsel %vm193_vm2, %v141_v22, 0  ;;  %v201_v33 = vsel %vm193_vm2, %v143_v23, 0  ;;  %v1780_v25 = vld [vmem:[%s2244_s3 + $0x22] ss:$8 sm:$0xf] }
  0xd5   :  { %v94_v30 = vpop.f32.mrf.mxu0  ;;  %v135_v31 = vpop.f32.mrf.mxu1  ;;  %v1775_v22 = vsub.s32 3, %v1660_v5  ;;  %v1783_v26 = vsub.s32 2, %v1660_v5 }
  0xd6   :  { %1552 = vmatprep.subr.msk.bf16.mxu0 %vm193_vm2, %v142_v28  ;;  %1558 = vmatprep.subr.msk.bf16.mxu1 %vm193_vm2, %v144_v29 }
  0xd7   :  { %221 = vmatpush1.bf16.msra.mxu0 %v195_v32  ;;  %302 = vmatpush1.bf16.msra.mxu1 %v201_v33  ;;  %v1121_v30 = vrot.slane %v1780_v25, %v1775_v22 }
  0xd8   :  { %1576 = vmatprep.subr.msk.bf16.mxu0 %vm193_vm2, %v142_v28  ;;  %1582 = vmatprep.subr.msk.bf16.mxu1 %vm193_vm2, %v144_v29 }
  0xda   :  { %1553 = vmatmul.mubr.msk.bf16.vlgmr.msra.gmra.mxu0 %vm177_vm3, %v1610_v34  ;;  %1559 = vmatmul.mubr.msk.bf16.vlgmr.msra.gmra.mxu1 %vm177_vm3, %v1610_v34 }
  0xdb   :  { %868 = vmatpush1.bf16.msra.mxu0 %v195_v32  ;;  %949 = vmatpush1.bf16.msra.mxu1 %v201_v33 }
  0xdc   :  { %1596 = vmatprep.subr.msk.bf16.mxu0 %vm193_vm2, %v142_v28  ;;  %1598 = vmatprep.subr.msk.bf16.mxu1 %vm193_vm2, %v144_v29  ;;  %v1113_v29 = vrot.slane %v1780_v25, %v1772_v21 }
  0xdd   :  { %248 = vmatprep.mubr.bf16.mxu0 %v1621_v4  ;;  %329 = vmatprep.mubr.bf16.mxu1 %v1621_v4 }
  0xe2   :  { %1554 = vmatmul.mubr.msk.bf16.gmra.mxu0 %vm177_vm3, %v1611_v35  ;;  %1560 = vmatmul.mubr.msk.bf16.gmra.mxu1 %vm177_vm3, %v1611_v35 }
  0xe3   :  { %258 = vmatprep.mubr.bf16.mxu0 %v1621_v4  ;;  %339 = vmatprep.mubr.bf16.mxu1 %v1621_v4 }
  0xea   :  { %1555 = vmatmul.mubr.msk.bf16.gmra.mxu0 %vm177_vm3, %v1612_v36  ;;  %1561 = vmatmul.mubr.msk.bf16.gmra.mxu1 %vm177_vm3, %v1612_v36 }
  0xeb   :  { %268 = vmatprep.mubr.bf16.mxu0 %v1621_v4  ;;  %349 = vmatprep.mubr.bf16.mxu1 %v1621_v4 }
  0xf2   :  { %1556 = vmatmul.mubr.msk.bf16.gmra.mxu0 %vm177_vm3, %v1613_v37  ;;  %1562 = vmatmul.mubr.msk.bf16.gmra.mxu1 %vm177_vm3, %v1613_v37 }
  0xf3   :  { %278 = vmatprep.mubr.bf16.mxu0 %v1621_v4  ;;  %359 = vmatprep.mubr.bf16.mxu1 %v1621_v4 }
  0xfa   :  { %1557 = vmatmul.mubr.msk.bf16.gmra.mxu0 %vm177_vm3, %v1614_v38  ;;  %1563 = vmatmul.mubr.msk.bf16.gmra.mxu1 %vm177_vm3, %v1614_v38 }
  0xfb   :  { %885 = vmatprep.mubr.bf16.mxu0 %v1621_v4  ;;  %966 = vmatprep.mubr.bf16.mxu1 %v1621_v4 }
 0x102   :  { %1577 = vmatmul.mubr.msk.bf16.vlgmr.msra.gmra.mxu0 %vm177_vm3, %v1615_v39  ;;  %1583 = vmatmul.mubr.msk.bf16.vlgmr.msra.gmra.mxu1 %vm177_vm3, %v1615_v39 }
 0x103   :  { %1444 = vmatpush1.bf16.msra.mxu0 %v195_v32  ;;  %1485 = vmatpush1.bf16.msra.mxu1 %v201_v33  ;;  %v1117_v33 = vrot.slane %v1780_v25, %v1783_v26 }
 0x104   :  { %895 = vmatprep.mubr.bf16.mxu0 %v1621_v4  ;;  %976 = vmatprep.mubr.bf16.mxu1 %v1621_v4 }
 0x10a   :  { %1578 = vmatmul.mubr.msk.bf16.gmra.mxu0 %vm177_vm3, %v1616_v40  ;;  %1584 = vmatmul.mubr.msk.bf16.gmra.mxu1 %vm177_vm3, %v1616_v40 }
 0x10b   :  { %905 = vmatprep.mubr.bf16.mxu0 %v1621_v4  ;;  %986 = vmatprep.mubr.bf16.mxu1 %v1621_v4 }
 0x112   :  { %1579 = vmatmul.mubr.msk.bf16.gmra.mxu0 %vm177_vm3, %v1617_v41  ;;  %1585 = vmatmul.mubr.msk.bf16.gmra.mxu1 %vm177_vm3, %v1617_v41 }
 0x113   :  { %915 = vmatprep.mubr.bf16.mxu0 %v1621_v4  ;;  %996 = vmatprep.mubr.bf16.mxu1 %v1621_v4 }
 0x11a   :  { %1580 = vmatmul.mubr.msk.bf16.gmra.mxu0 %vm177_vm3, %v1618_v42  ;;  %1586 = vmatmul.mubr.msk.bf16.gmra.mxu1 %vm177_vm3, %v1618_v42 }
 0x11b   :  { %925 = vmatprep.mubr.bf16.mxu0 %v1621_v4  ;;  %1006 = vmatprep.mubr.bf16.mxu1 %v1621_v4 }
 0x122   :  { %1581 = vmatmul.mubr.msk.bf16.gmra.mxu0 %vm177_vm3, %v1619_v43  ;;  %1587 = vmatmul.mubr.msk.bf16.gmra.mxu1 %vm177_vm3, %v1619_v43 }
 0x123   :  { %1502 = vmatprep.mubr.bf16.mxu1 %v1621_v4  ;;  %1461 = vmatprep.mubr.bf16.mxu0 %v1621_v4 }
 0x12a   :  { %1599 = vmatmul.mubr.msk.bf16.vlgmr.msra.gmra.mxu1 %vm177_vm3, %v1425_v44  ;;  %1597 = vmatmul.mubr.msk.bf16.vlgmr.msra.gmra.mxu0 %vm177_vm3, %v1425_v44 }
 0x19a   :  { %v240_v45 = vpop.f32.mrf.mxu0  ;;  %v321_v46 = vpop.f32.mrf.mxu1 }
 0x19b   :  { %408 = vrot.lane.b32.xlu0 %v240_v45, %s1622_s13  ;;  %412 = vrot.lane.b32.xlu1 %v321_v46, %s1622_s13 }
 0x19c   :  { %v242_v47 = vpop.f32.mrf.mxu0  ;;  %v323_v48 = vpop.f32.mrf.mxu1 }
 0x19e   :  { %v244_v49 = vpop.f32.mrf.mxu0  ;;  %v325_v50 = vpop.f32.mrf.mxu1 }
 0x19f   :  { %410 = vrot.lane.b32.xlu0 %v242_v47, %s1622_s13  ;;  %414 = vrot.lane.b32.xlu1 %v323_v48, %s1622_s13 }
 0x1a0   :  { %v246_v51 = vpop.f32.mrf.mxu0  ;;  %v327_v52 = vpop.f32.mrf.mxu1 }
 0x1a2   :  { %v250_v53 = vpop.f32.mrf.mxu0  ;;  %v331_v54 = vpop.f32.mrf.mxu1 }
 0x1a3   :  { %457 = vrot.lane.b32.xlu0 %v244_v49, %s1623_s2  ;;  %459 = vrot.lane.b32.xlu1 %v246_v51, %s1623_s2 }
 0x1a4   :  { %v252_v55 = vpop.f32.mrf.mxu0  ;;  %v333_v56 = vpop.f32.mrf.mxu1 }
 0x1a6   :  { %v254_v57 = vpop.f32.mrf.mxu0  ;;  %v335_v58 = vpop.f32.mrf.mxu1 }
 0x1a7   :  { %461 = vrot.lane.b32.xlu0 %v325_v50, %s1623_s2  ;;  %463 = vrot.lane.b32.xlu1 %v327_v52, %s1623_s2 }
 0x1a8   :  { %v256_v59 = vpop.f32.mrf.mxu0  ;;  %v337_v60 = vpop.f32.mrf.mxu1 }
 0x1aa   :  { %v1759_v61 = vpop.f32.mrf.mxu0  ;;  %v1761_v62 = vpop.f32.mrf.mxu1 }
 0x1ab   :  { %505 = vrot.lane.b32.xlu0 %v250_v53, %s1624_s14  ;;  %507 = vrot.lane.b32.xlu1 %v252_v55, %s1624_s14 }
 0x1ac   :  { %v1765_v63 = vpop.f32.mrf.mxu0  ;;  %v1767_v1 = vpop.f32.mrf.mxu1 }
 0x1ae   :  { %v264_v2 = vpop.f32.mrf.mxu0  ;;  %v345_v3 = vpop.f32.mrf.mxu1 }
 0x1af   :  { %509 = vrot.lane.b32.xlu0 %v331_v54, %s1624_s14  ;;  %511 = vrot.lane.b32.xlu1 %v333_v56, %s1624_s14 }
 0x1b0   :  { %v266_v4 = vpop.f32.mrf.mxu0  ;;  %v347_v6 = vpop.f32.mrf.mxu1 }
 0x1b2   :  { %v270_v7 = vpop.f32.mrf.mxu0  ;;  %v351_v8 = vpop.f32.mrf.mxu1 }
 0x1b3   :  { %553 = vrot.lane.b32.xlu0 %v254_v57, %s1625_s15  ;;  %555 = vrot.lane.b32.xlu1 %v256_v59, %s1625_s15  ;;  %v1822_v57 = vld [vmem:[%s2244_s3 + $0x40] ss:$8 sm:$0xf] }
 0x1b4   :  { %v272_v9 = vpop.f32.mrf.mxu0  ;;  %v353_v10 = vpop.f32.mrf.mxu1 }
 0x1b6   :  { %v274_v11 = vpop.f32.mrf.mxu0  ;;  %v355_v12 = vpop.f32.mrf.mxu1 }
 0x1b7   :  { %557 = vrot.lane.b32.xlu0 %v335_v58, %s1625_s15  ;;  %559 = vrot.lane.b32.xlu1 %v337_v60, %s1625_s15  ;;  %v1353_v60 = vrot.slane %v1822_v57, %v1775_v22 }
 0x1b8   :  { %v276_v13 = vpop.f32.mrf.mxu0  ;;  %v357_v14 = vpop.f32.mrf.mxu1 }
 0x1ba   :  { %v280_v15 = vpop.f32.mrf.mxu0  ;;  %v361_v16 = vpop.f32.mrf.mxu1 }
 0x1bb   :  { %609 = vrot.lane.b32.xlu0 %v264_v2, %s1626_s16  ;;  %611 = vrot.lane.b32.xlu1 %v266_v4, %s1626_s16  ;;  %v1345_v2 = vrot.slane %v1822_v57, %v1772_v21 }
 0x1bc   :  { %v282_v17 = vpop.f32.mrf.mxu0  ;;  %v363_v18 = vpop.f32.mrf.mxu1 }
 0x1be   :  { %v284_v19 = vpop.f32.mrf.mxu0  ;;  %v365_v20 = vpop.f32.mrf.mxu1 }
 0x1bf   :  { %613 = vrot.lane.b32.xlu0 %v345_v3, %s1626_s16  ;;  %615 = vrot.lane.b32.xlu1 %v347_v6, %s1626_s16  ;;  %v1349_v6 = vrot.slane %v1822_v57, %v1783_v26 }
 0x1c0   :  { %v285_v23 = vpop.f32.mrf.mxu0  ;;  %v366_v24 = vpop.f32.mrf.mxu1 }
 0x1c2   :  { %v887_v27 = vpop.f32.mrf.mxu0  ;;  %v968_v28 = vpop.f32.mrf.mxu1 }
 0x1c3   :  { %657 = vrot.lane.b32.xlu0 %v270_v7, %s1622_s13  ;;  %659 = vrot.lane.b32.xlu1 %v272_v9, %s1622_s13 }
 0x1c4   :  { %v889_v31 = vpop.f32.mrf.mxu0  ;;  %v970_v32 = vpop.f32.mrf.mxu1 }
 0x1c6   :  { %v891_v34 = vpop.f32.mrf.mxu0  ;;  %v972_v35 = vpop.f32.mrf.mxu1 }
 0x1c7   :  { %661 = vrot.lane.b32.xlu0 %v351_v8, %s1622_s13  ;;  %663 = vrot.lane.b32.xlu1 %v353_v10, %s1622_s13  ;;  %v1795_v36 = vmul.f32 %v1113_v29, %v891_v34  ;;  %v1797_v37 = vmul.f32 %v1121_v30, %v972_v35 }
 0x1c8   :  { %v893_v38 = vpop.f32.mrf.mxu0  ;;  %v1799_v39 = vpop.f32.mrf.mxu1 }
 0x1c9   :  { %v1801_v40 = vmul.f32 %v1117_v33, %v893_v38 }
 0x1ca   :  { %v897_v41 = vpop.f32.mrf.mxu0  ;;  %v978_v42 = vpop.f32.mrf.mxu1 }
 0x1cb   :  { %704 = vrot.lane.b32.xlu0 %v274_v11, %s1623_s2  ;;  %706 = vrot.lane.b32.xlu1 %v276_v13, %s1623_s2 }
 0x1cc   :  { %v899_v43 = vpop.f32.mrf.mxu0  ;;  %v980_v44 = vpop.f32.mrf.mxu1 }
 0x1ce   :  { %v901_v45 = vpop.f32.mrf.mxu0  ;;  %v982_v46 = vpop.f32.mrf.mxu1 }
 0x1cf   :  { %708 = vrot.lane.b32.xlu0 %v355_v12, %s1623_s2  ;;  %710 = vrot.lane.b32.xlu1 %v357_v14, %s1623_s2 }
 0x1d0   :  { %v903_v47 = vpop.f32.mrf.mxu0  ;;  %v984_v48 = vpop.f32.mrf.mxu1 }
 0x1d2   :  { %v1807_v49 = vpop.f32.mrf.mxu0  ;;  %v1809_v50 = vpop.f32.mrf.mxu1 }
 0x1d3   :  { %751 = vrot.lane.b32.xlu0 %v280_v15, %s1624_s14  ;;  %753 = vrot.lane.b32.xlu1 %v282_v17, %s1624_s14 }
 0x1d4   :  { %v1813_v51 = vpop.f32.mrf.mxu0  ;;  %v1815_v52 = vpop.f32.mrf.mxu1 }
 0x1d6   :  { %v911_v53 = vpop.f32.mrf.mxu0  ;;  %v992_v54 = vpop.f32.mrf.mxu1 }
 0x1d7   :  { %755 = vrot.lane.b32.xlu0 %v361_v16, %s1624_s14  ;;  %757 = vrot.lane.b32.xlu1 %v363_v18, %s1624_s14 }
 0x1d8   :  { %v913_v55 = vpop.f32.mrf.mxu0  ;;  %v994_v56 = vpop.f32.mrf.mxu1 }
 0x1da   :  { %v917_v58 = vpop.f32.mrf.mxu0  ;;  %v998_v59 = vpop.f32.mrf.mxu1 }
 0x1db   :  { %1057 = vrot.lane.b32.xlu0 %v889_v31, %s1627_s19  ;;  %1055 = vrot.lane.b32.xlu1 %v887_v27, %s1627_s19 }
 0x1dc   :  { %v919_v3 = vpop.f32.mrf.mxu0  ;;  %v1000_v4 = vpop.f32.mrf.mxu1 }
 0x1de   :  { %v921_v7 = vpop.f32.mrf.mxu0  ;;  %v1002_v8 = vpop.f32.mrf.mxu1 }
 0x1df   :  { %1059 = vrot.lane.b32.xlu1 %v968_v28, %s1627_s19  ;;  %1061 = vrot.lane.b32.xlu0 %v970_v32, %s1627_s19  ;;  %v1834_v9 = vmul.f32 %v1353_v60, %v921_v7  ;;  %v1836_v10 = vmul.f32 %v1345_v2, %v1002_v8 }
 0x1e0   :  { %v1838_v11 = vpop.f32.mrf.mxu0  ;;  %v1004_v12 = vpop.f32.mrf.mxu1 }
 0x1e1   :  { %v1840_v13 = vmul.f32 %v1349_v6, %v1004_v12 }
 0x1e2   :  { %v927_v14 = vpop.f32.mrf.mxu0  ;;  %v1008_v15 = vpop.f32.mrf.mxu1 }
 0x1e3   :  { %1138 = vrot.lane.b32.xlu1 %v897_v41, %s1628_s20  ;;  %1140 = vrot.lane.b32.xlu0 %v899_v43, %s1628_s20  ;;  %v1900_v43 = vld [vmem:[%s2244_s3] ss:$8 sm:$0xf] }
 0x1e4   :  { %v929_v16 = vpop.f32.mrf.mxu0  ;;  %v1010_v17 = vpop.f32.mrf.mxu1 }
 0x1e6   :  { %v931_v18 = vpop.f32.mrf.mxu0  ;;  %v1012_v19 = vpop.f32.mrf.mxu1 }
 0x1e7   :  { %1142 = vrot.lane.b32.xlu1 %v978_v42, %s1628_s20  ;;  %1144 = vrot.lane.b32.xlu0 %v980_v44, %s1628_s20  ;;  %v1895_v42 = vand.u32 127, %v25_v0  ;;  %v440_v0 = vrot.slane %v1900_v43, %v1775_v22 }
 0x1e8   :  { %v932_v20 = vpop.f32.mrf.mxu0  ;;  %v1013_v23 = vpop.f32.mrf.mxu1 }
 0x1e9   :  { %vm418_vm4 = vcmp.lt.s32.totalorder %v1895_v42, 68  ;;  %vm465_vm5 = vcmp.lt.s32.totalorder %v1895_v42, 64  ;;  %vm513_vm6 = vcmp.lt.s32.totalorder %v1895_v42, 60  ;;  %vm561_vm7 = vcmp.lt.s32.totalorder %v1895_v42, 4 }
 0x1ea   :  { %v1854_v24 = vpop.f32.mrf.mxu1  ;;  %v1856_v27 = vpop.f32.mrf.mxu0  ;;  %vm617_vm8 = vcmp.lt.s32.totalorder %v1895_v42, 124  ;;  %vm1063_vm9 = vcmp.lt.s32.totalorder %v1895_v42, 8  ;;  %vm1146_vm10 = vcmp.lt.s32.totalorder %v1895_v42, 120 }
 0x1eb   :  { %1188 = vrot.lane.b32.xlu1 %v903_v47, %s1627_s19  ;;  %1186 = vrot.lane.b32.xlu0 %v901_v45, %s1627_s19  ;;  %v1525_v35 = vmax.f32 %v1854_v24, 0.0  ;;  %v1523_v38 = vmax.f32 %v1856_v27, 0.0  ;;  %v436_v47 = vrot.slane %v1900_v43, %v1783_v26 }
 0x1ec   :  { %v1860_v28 = vpop.f32.mrf.mxu1  ;;  %v1862_v29 = vpop.f32.mrf.mxu0 }
 0x1ed   :  { %v1526_v32 = vmax.f32 %v1860_v28, 0.0  ;;  %v1524_v41 = vmax.f32 %v1862_v29, 0.0  ;;  %1529 = vst [vmem:[%s2245_s4 + $0x70] sm:$0xff] %v1525_v35  ;;  %1527 = vst [vmem:[%s2245_s4 + $0x60] sm:$0xff] %v1523_v38 }
 0x1ee   :  { %v1467_v30 = vpop.f32.mrf.mxu0  ;;  %v1508_v31 = vpop.f32.mrf.mxu1 }
 0x1ef   :  { %1190 = vrot.lane.b32.xlu0 %v982_v46, %s1627_s19  ;;  %1192 = vrot.lane.b32.xlu1 %v984_v48, %s1627_s19  ;;  %1530 = vst [vmem:[%s2245_s4 + $0x78] sm:$0xff] %v1526_v32  ;;  %1528 = vst [vmem:[%s2245_s4 + $0x68] sm:$0xff] %v1524_v41  ;;  %v432_v46 = vrot.slane %v1900_v43, %v1772_v21 }
 0x1f0   :  { %v1468_v33 = vpop.f32.mrf.mxu0  ;;  %v1509_v34 = vpop.f32.mrf.mxu1  ;;  %v1914_v48 = vld [vmem:[%s2244_s3 + $0x1] ss:$8 sm:$0xf] }
 0x1f1   :  { %v484_v12 = vrot.slane %v1914_v48, %v1783_v26 }
 0x1f3   :  { %1241 = vrot.lane.b32.xlu0 %v911_v53, %s1628_s20  ;;  %1243 = vrot.lane.b32.xlu1 %v913_v55, %s1628_s20 }
 0x1f7   :  { %1245 = vrot.lane.b32.xlu0 %v992_v54, %s1628_s20  ;;  %1247 = vrot.lane.b32.xlu1 %v994_v56, %s1628_s20 }
 0x1fb   :  { %1288 = vrot.lane.b32.xlu0 %v917_v58, %s1627_s19  ;;  %1290 = vrot.lane.b32.xlu1 %v919_v3, %s1627_s19  ;;  %v480_v3 = vrot.slane %v1914_v48, %v1772_v21 }
 0x1ff   :  { %1292 = vrot.lane.b32.xlu0 %v998_v59, %s1627_s19  ;;  %1294 = vrot.lane.b32.xlu1 %v1000_v4, %s1627_s19 }
 0x203   :  { %1370 = vrot.lane.b32.xlu0 %v927_v14, %s1628_s20  ;;  %1372 = vrot.lane.b32.xlu1 %v929_v16, %s1628_s20  ;;  %v488_v14 = vrot.slane %v1914_v48, %v1775_v22 }
 0x207   :  { %1374 = vrot.lane.b32.xlu0 %v1008_v15, %s1628_s20  ;;  %1376 = vrot.lane.b32.xlu1 %v1010_v17, %s1628_s20  ;;  %v1938_v15 = vld [vmem:[%s2244_s3 + $0x2] ss:$8 sm:$0xf] }
 0x208   :  { %v528_v31 = vrot.slane %v1938_v15, %v1772_v21 }
 0x20d   :  { %v1902_v44 = vpop.permute.xlu0 %408  ;;  %v413_v45 = vpop.permute.xlu1 %412 }
 0x211   :  { %v411_v53 = vpop.permute.xlu0 %410  ;;  %v1916_v54 = vpop.permute.xlu1 %414 }
 0x212   :  { %v420_v55 = vsel %vm418_vm4, %v411_v53, %v413_v45  ;;  %v421_v56 = vsel %vm418_vm4, %v1902_v44, %v411_v53  ;;  %v419_v58 = vsel %vm418_vm4, %v413_v45, %v1916_v54  ;;  %v532_v53 = vrot.slane %v1938_v15, %v1783_v26 }
 0x213   :  { %v446_v59 = vmul.f32 %v432_v46, %v421_v56  ;;  %v447_v60 = vmul.f32 %v436_v47, %v420_v55  ;;  %v448_v2 = vmul.f32 %v440_v0, %v419_v58  ;;  %v536_v55 = vrot.slane %v1938_v15, %v1775_v22  ;;  %v1956_v56 = vld [vmem:[%s2244_s3 + $0x3] ss:$8 sm:$0xf] }
 0x215   :  { %v458_v4 = vpop.permute.xlu0 %457  ;;  %v460_v6 = vpop.permute.xlu1 %459 }
 0x216   :  { %v468_v7 = vsel %vm465_vm5, %v458_v4, %v460_v6 }
 0x217   :  { %v494_v8 = vmul.f32 %v480_v3, %v468_v7 }
 0x219   :  { %v498_v16 = vadd.f32 %v494_v8, %v446_v59  ;;  %v462_v17 = vpop.permute.xlu0 %461  ;;  %v464_v18 = vpop.permute.xlu1 %463  ;;  %v576_v8 = vrot.slane %v1956_v56, %v1772_v21 }
 0x21a   :  { %v467_v19 = vsel %vm465_vm5, %v460_v6, %v462_v17  ;;  %v466_v20 = vsel %vm465_vm5, %v462_v17, %v464_v18 }
 0x21b   :  { %v495_v23 = vmul.f32 %v484_v12, %v467_v19  ;;  %v496_v30 = vmul.f32 %v488_v14, %v466_v20 }
 0x21d   :  { %v499_v33 = vadd.f32 %v495_v23, %v447_v60  ;;  %v500_v34 = vadd.f32 %v496_v30, %v448_v2  ;;  %v506_v45 = vpop.permute.xlu0 %505  ;;  %v508_v46 = vpop.permute.xlu1 %507  ;;  %v580_v23 = vrot.slane %v1956_v56, %v1783_v26  ;;  %v584_v30 = vrot.slane %v1956_v56, %v1775_v22 }
 0x21e   :  { %v516_v47 = vsel %vm513_vm6, %v506_v45, %v508_v46 }
 0x21f   :  { %v542_v0 = vmul.f32 %v528_v31, %v516_v47 }
 0x221   :  { %v546_v58 = vadd.f32 %v542_v0, %v498_v16  ;;  %v510_v59 = vpop.permute.xlu0 %509  ;;  %v512_v60 = vpop.permute.xlu1 %511 }
 0x222   :  { %v515_v2 = vsel %vm513_vm6, %v508_v46, %v510_v59  ;;  %v514_v3 = vsel %vm513_vm6, %v510_v59, %v512_v60 }
 0x223   :  { %v543_v6 = vmul.f32 %v532_v53, %v515_v2  ;;  %v544_v7 = vmul.f32 %v536_v55, %v514_v3 }
 0x225   :  { %v547_v12 = vadd.f32 %v543_v6, %v499_v33  ;;  %v548_v14 = vadd.f32 %v544_v7, %v500_v34  ;;  %v554_v17 = vpop.permute.xlu0 %553  ;;  %v556_v19 = vpop.permute.xlu1 %555  ;;  %v1976_v34 = vsub.s32 0, %v1660_v5  ;;  %v469_v7 = vsel %vm465_vm5, %v464_v18, %v458_v4 }
 0x226   :  { %v564_v16 = vsel %vm561_vm7, %v554_v17, %v556_v19 }
 0x227   :  { %v590_v20 = vmul.f32 %v576_v8, %v564_v16  ;;  %v476_v59 = vrot.slane %v1914_v48, %v1976_v34  ;;  %v1567_v8 = vld [vmem:[%s2244_s3 + $0x5] ss:$8 sm:$0xf]  ;;  %v428_v5 = vrot.slane %v1900_v43, %v1976_v34  ;;  %v524_v4 = vrot.slane %v1938_v15, %v1976_v34 }
 0x228   :  { %v636_v16 = vrot.slane %v1567_v8, %v1783_v26  ;;  %v640_v48 = vrot.slane %v1567_v8, %v1775_v22  ;;  %v572_v18 = vrot.slane %v1956_v56, %v1976_v34 }
 0x229   :  { %v594_v31 = vadd.f32 %v590_v20, %v546_v58  ;;  %v558_v46 = vpop.permute.xlu0 %557  ;;  %v560_v47 = vpop.permute.xlu1 %559  ;;  %v493_v43 = vmul.f32 %v476_v59, %v469_v7 }
 0x22a   :  { %v563_v0 = vsel %vm561_vm7, %v556_v19, %v558_v46  ;;  %v562_v33 = vsel %vm561_vm7, %v558_v46, %v560_v47  ;;  %v632_v19 = vrot.slane %v1567_v8, %v1772_v21  ;;  %v565_v20 = vsel %vm561_vm7, %v560_v47, %v554_v17 }
 0x22b   :  { %v591_v53 = vmul.f32 %v580_v23, %v563_v0  ;;  %v592_v55 = vmul.f32 %v584_v30, %v562_v33  ;;  %v602_v23 = vadd.f32 %v594_v31, %v1765_v63 }
 0x22d   :  { %v595_v2 = vadd.f32 %v591_v53, %v547_v12  ;;  %v596_v3 = vadd.f32 %v592_v55, %v548_v14  ;;  %v610_v6 = vpop.permute.xlu0 %609  ;;  %v612_v58 = vpop.permute.xlu1 %611  ;;  %v422_v12 = vsel %vm418_vm4, %v1916_v54, %v1902_v44  ;;  %v517_v14 = vsel %vm513_vm6, %v512_v60, %v506_v45 }
 0x22e   :  { %v445_v47 = vmul.f32 %v428_v5, %v422_v12  ;;  %v541_v63 = vmul.f32 %v524_v4, %v517_v14  ;;  %v628_v5 = vrot.slane %v1567_v8, %v1976_v34  ;;  %v620_v14 = vsel %vm617_vm8, %v610_v6, %v612_v58  ;;  %v1569_v8 = vld [vmem:[%s2244_s3 + $0x7] ss:$8 sm:$0xf] }
 0x22f   :  { %v603_v54 = vadd.f32 %v595_v2, %v1761_v62  ;;  %v604_v45 = vadd.f32 %v596_v3, %v1767_v1  ;;  %v589_v62 = vmul.f32 %v572_v18, %v565_v20  ;;  %v1568_v2 = vld [vmem:[%s2244_s3 + $0x6] ss:$8 sm:$0xf] }
 0x230   :  { %v497_v7 = vadd.f32 %v493_v43, %v445_v47  ;;  %v687_v1 = vrot.slane %v1568_v2, %v1775_v22  ;;  %v722_v47 = vrot.slane %v1569_v8, %v1976_v34 }
 0x231   :  { %v614_v30 = vpop.permute.xlu0 %613  ;;  %v616_v46 = vpop.permute.xlu1 %615 }
 0x232   :  { %v619_v44 = vsel %vm617_vm8, %v612_v58, %v614_v30  ;;  %v618_v15 = vsel %vm617_vm8, %v614_v30, %v616_v46  ;;  %v621_v56 = vsel %vm617_vm8, %v616_v46, %v610_v6  ;;  %v679_v30 = vrot.slane %v1568_v2, %v1772_v21  ;;  %v1570_v58 = vld [vmem:[%s2244_s3 + $0x20] ss:$8 sm:$0xf] }
 0x233   :  { %v646_v0 = vmul.f32 %v632_v19, %v619_v44  ;;  %v647_v60 = vmul.f32 %v636_v16, %v618_v15  ;;  %v648_v17 = vmul.f32 %v640_v48, %v621_v56  ;;  %v683_v19 = vrot.slane %v1568_v2, %v1783_v26 }
 0x234   :  { %v545_v3 = vadd.f32 %v541_v63, %v497_v7  ;;  %v675_v44 = vrot.slane %v1568_v2, %v1976_v34  ;;  %v726_v63 = vrot.slane %v1569_v8, %v1772_v21 }
 0x235   :  { %v650_v31 = vadd.f32 %v646_v0, %v602_v23  ;;  %v651_v33 = vadd.f32 %v647_v60, %v603_v54  ;;  %v652_v53 = vadd.f32 %v648_v17, %v604_v45  ;;  %v658_v55 = vpop.permute.xlu0 %657  ;;  %v660_v59 = vpop.permute.xlu1 %659  ;;  %v645_v17 = vmul.f32 %v628_v5, %v620_v14 }
 0x236   :  { %v593_v12 = vadd.f32 %v589_v62, %v545_v3  ;;  %v667_v6 = vsel %vm418_vm4, %v658_v55, %v660_v59 }
 0x238   :  { %v601_v60 = vadd.f32 %v593_v12, %v1759_v61  ;;  %v692_v61 = vmul.f32 %v675_v44, %v667_v6  ;;  %v777_v44 = vrot.slane %v1570_v58, %v1783_v26 }
 0x239   :  { %v662_v16 = vpop.permute.xlu0 %661  ;;  %v664_v48 = vpop.permute.xlu1 %663 }
 0x23a   :  { %v666_v4 = vsel %vm418_vm4, %v660_v59, %v662_v16  ;;  %v665_v18 = vsel %vm418_vm4, %v662_v16, %v664_v48  ;;  %v668_v43 = vsel %vm418_vm4, %v664_v48, %v658_v55  ;;  %v769_v55 = vrot.slane %v1570_v58, %v1976_v34 }
 0x23b   :  { %v693_v20 = vmul.f32 %v679_v30, %v666_v4  ;;  %v694_v23 = vmul.f32 %v683_v19, %v665_v18  ;;  %v695_v46 = vmul.f32 %v687_v1, %v668_v43  ;;  %v649_v59 = vadd.f32 %v645_v17, %v601_v60 }
 0x23d   :  { %v697_v54 = vadd.f32 %v693_v20, %v650_v31  ;;  %v698_v15 = vadd.f32 %v694_v23, %v651_v33  ;;  %v699_v56 = vadd.f32 %v695_v46, %v652_v53  ;;  %v705_v0 = vpop.permute.xlu0 %704  ;;  %v707_v45 = vpop.permute.xlu1 %706  ;;  %v730_v31 = vrot.slane %v1569_v8, %v1783_v26 }
 0x23e   :  { %v734_v33 = vrot.slane %v1569_v8, %v1775_v22  ;;  %v714_v53 = vsel %vm465_vm5, %v705_v0, %v707_v45  ;;  %v696_v48 = vadd.f32 %v692_v61, %v649_v59  ;;  %v773_v23 = vrot.slane %v1570_v58, %v1772_v21 }
 0x23f   :  { %v739_v1 = vmul.f32 %v722_v47, %v714_v53  ;;  %v1109_v53 = vrot.slane %v1780_v25, %v1976_v34 }
 0x241   :  { %v709_v7 = vpop.permute.xlu0 %708  ;;  %v711_v62 = vpop.permute.xlu1 %710  ;;  %v743_v46 = vadd.f32 %v739_v1, %v696_v48  ;;  %v1590_v48 = vld [vmem:[%s2244_s3 + $0x23] ss:$8 sm:$0xf] }
 0x242   :  { %v713_v2 = vsel %vm465_vm5, %v707_v45, %v709_v7  ;;  %v712_v30 = vsel %vm465_vm5, %v709_v7, %v711_v62  ;;  %v715_v19 = vsel %vm465_vm5, %v711_v62, %v705_v0  ;;  %v781_v0 = vrot.slane %v1570_v58, %v1775_v22  ;;  %v1588_v45 = vld [vmem:[%s2244_s3 + $0x21] ss:$8 sm:$0xf] }
 0x243   :  { %v740_v3 = vmul.f32 %v726_v63, %v713_v2  ;;  %v741_v5 = vmul.f32 %v730_v31, %v712_v30  ;;  %v742_v16 = vmul.f32 %v734_v33, %v715_v19  ;;  %v1082_v58 = vrot.slane %v1588_v45, %v1783_v26 }
 0x244   :  { %v1086_v30 = vrot.slane %v1588_v45, %v1775_v22  ;;  %v1074_v25 = vrot.slane %v1588_v45, %v1976_v34  ;;  %v1078_v19 = vrot.slane %v1588_v45, %v1772_v21 }
 0x245   :  { %v744_v12 = vadd.f32 %v740_v3, %v697_v54  ;;  %v745_v4 = vadd.f32 %v741_v5, %v698_v15  ;;  %v746_v18 = vadd.f32 %v742_v16, %v699_v56  ;;  %v752_v43 = vpop.permute.xlu0 %751  ;;  %v754_v14 = vpop.permute.xlu1 %753 }
 0x246   :  { %v761_v20 = vsel %vm513_vm6, %v752_v43, %v754_v14 }
 0x247   :  { %v786_v8 = vmul.f32 %v769_v55, %v761_v20 }
 0x249   :  { %v2058_v54 = vadd.f32 %v786_v8, %v743_v46  ;;  %v756_v15 = vpop.permute.xlu0 %755  ;;  %v758_v56 = vpop.permute.xlu1 %757 }
 0x24a   :  { %v760_v60 = vsel %vm513_vm6, %v754_v14, %v756_v15  ;;  %v759_v17 = vsel %vm513_vm6, %v756_v15, %v758_v56  ;;  %v762_v6 = vsel %vm513_vm6, %v758_v56, %v752_v43 }
 0x24b   :  { %v794_v47 = vmax.f32 %v2058_v54, 0.0  ;;  %v787_v63 = vmul.f32 %v773_v23, %v760_v60  ;;  %v788_v31 = vmul.f32 %v777_v44, %v759_v17  ;;  %v789_v33 = vmul.f32 %v781_v0, %v762_v6 }
 0x24c   :  { %v1161_v44 = vrot.slane %v1590_v48, %v1772_v21  ;;  %v1165_v6 = vrot.slane %v1590_v48, %v1783_v26 }
 0x24d   :  { %798 = vst [vmem:[%s2245_s4 + $0x20] sm:$0xff] %v794_v47  ;;  %v2076_v61 = vadd.f32 %v787_v63, %v744_v12  ;;  %v2078_v7 = vadd.f32 %v788_v31, %v745_v4  ;;  %v2080_v62 = vadd.f32 %v789_v33, %v746_v18  ;;  %v1058_v55 = vpop.permute.xlu0 %1057  ;;  %v1056_v59 = vpop.permute.xlu1 %1055  ;;  %v1126_v12 = vmul.f32 %v1109_v53, %v1799_v39  ;;  %v1591_v31 = vld [vmem:[%s2244_s3 + $0x24] ss:$8 sm:$0xf] }
 0x24e   :  { %v1066_v2 = vsel %vm1063_vm9, %v1056_v59, %v1058_v55  ;;  %v1169_v63 = vrot.slane %v1590_v48, %v1775_v22 }
 0x24f   :  { %v795_v1 = vmax.f32 %v2076_v61, 0.0  ;;  %v796_v3 = vmax.f32 %v2078_v7, 0.0  ;;  %v797_v5 = vmax.f32 %v2080_v62, 0.0  ;;  %v1093_v16 = vmul.f32 %v1082_v58, %v1066_v2 }
 0x250   :  { %v1157_v58 = vrot.slane %v1590_v48, %v1976_v34 }
 0x251   :  { %799 = vst [vmem:[%s2245_s4 + $0x28] sm:$0xff] %v795_v1  ;;  %800 = vst [vmem:[%s2245_s4 + $0x30] sm:$0xff] %v796_v3  ;;  %v1132_v39 = vadd.f32 %v1801_v40, %v1093_v16  ;;  %v1060_v4 = vpop.permute.xlu1 %1059  ;;  %v1062_v18 = vpop.permute.xlu0 %1061 }
 0x252   :  { %801 = vst [vmem:[%s2245_s4 + $0x38] sm:$0xff] %v797_v5  ;;  %v1065_v43 = vsel %vm1063_vm9, %v1058_v55, %v1060_v4  ;;  %v1064_v14 = vsel %vm1063_vm9, %v1060_v4, %v1062_v18  ;;  %v1067_v20 = vsel %vm1063_vm9, %v1062_v18, %v1056_v59 }
 0x253   :  { %v1094_v23 = vmul.f32 %v1086_v30, %v1065_v43  ;;  %v1091_v46 = vmul.f32 %v1074_v25, %v1064_v14  ;;  %v1092_v8 = vmul.f32 %v1078_v19, %v1067_v20  ;;  %v1208_v19 = vrot.slane %v1591_v31, %v1772_v21 }
 0x254   :  { %v1212_v20 = vrot.slane %v1591_v31, %v1783_v26 }
 0x255   :  { %v1133_v40 = vadd.f32 %v1797_v37, %v1094_v23  ;;  %v1130_v0 = vadd.f32 %v1126_v12, %v1091_v46  ;;  %v1131_v45 = vadd.f32 %v1795_v36, %v1092_v8  ;;  %v1139_v15 = vpop.permute.xlu1 %1138  ;;  %v1141_v56 = vpop.permute.xlu0 %1140  ;;  %v1204_v23 = vrot.slane %v1591_v31, %v1976_v34  ;;  %v1592_v8 = vld [vmem:[%s2244_s3 + $0x26] ss:$8 sm:$0xf] }
 0x256   :  { %v1149_v60 = vsel %vm1146_vm10, %v1139_v15, %v1141_v56  ;;  %v1216_v46 = vrot.slane %v1591_v31, %v1775_v22 }
 0x257   :  { %v1175_v17 = vmul.f32 %v1161_v44, %v1149_v60 }
 0x259   :  { %v1179_v37 = vadd.f32 %v1175_v17, %v1131_v45  ;;  %v1143_v33 = vpop.permute.xlu1 %1142  ;;  %v1145_v53 = vpop.permute.xlu0 %1144 }
 0x25a   :  { %v1148_v36 = vsel %vm1146_vm10, %v1141_v56, %v1143_v33  ;;  %v1147_v55 = vsel %vm1146_vm10, %v1143_v33, %v1145_v53  ;;  %v1150_v59 = vsel %vm1146_vm10, %v1145_v53, %v1139_v15 }
 0x25b   :  { %v1176_v2 = vmul.f32 %v1165_v6, %v1148_v36  ;;  %v1174_v30 = vmul.f32 %v1157_v58, %v1150_v59  ;;  %v1177_v25 = vmul.f32 %v1169_v63, %v1147_v55  ;;  %v1259_v6 = vrot.slane %v1592_v8, %v1976_v34  ;;  %v1593_v55 = vld [vmem:[%s2244_s3 + $0x27] ss:$8 sm:$0xf] }
 0x25c   :  { %v1263_v36 = vrot.slane %v1592_v8, %v1772_v21 }
 0x25d   :  { %v1180_v16 = vadd.f32 %v1176_v2, %v1132_v39  ;;  %v1178_v48 = vadd.f32 %v1174_v30, %v1130_v0  ;;  %v1181_v12 = vadd.f32 %v1177_v25, %v1133_v40  ;;  %v1189_v4 = vpop.permute.xlu1 %1188  ;;  %v1187_v18 = vpop.permute.xlu0 %1186  ;;  %v1267_v30 = vrot.slane %v1592_v8, %v1783_v26 }
 0x25e   :  { %v1196_v43 = vsel %vm1063_vm9, %v1187_v18, %v1189_v4  ;;  %v1271_v25 = vrot.slane %v1592_v8, %v1775_v22  ;;  %v1341_v8 = vrot.slane %v1822_v57, %v1976_v34 }
 0x25f   :  { %v1222_v14 = vmul.f32 %v1208_v19, %v1196_v43 }
 0x260   :  { %v1358_v57 = vmul.f32 %v1341_v8, %v1838_v11 }
 0x261   :  { %v1226_v44 = vadd.f32 %v1222_v14, %v1179_v37  ;;  %v1191_v39 = vpop.permute.xlu0 %1190  ;;  %v1193_v0 = vpop.permute.xlu1 %1192 }
 0x262   :  { %v1195_v40 = vsel %vm1063_vm9, %v1189_v4, %v1191_v39  ;;  %v1194_v45 = vsel %vm1063_vm9, %v1191_v39, %v1193_v0  ;;  %v1197_v15 = vsel %vm1063_vm9, %v1193_v0, %v1187_v18  ;;  %v1306_v4 = vrot.slane %v1593_v55, %v1976_v34 }
 0x263   :  { %v1223_v56 = vmul.f32 %v1212_v20, %v1195_v40  ;;  %v1221_v60 = vmul.f32 %v1204_v23, %v1197_v15  ;;  %v1224_v17 = vmul.f32 %v1216_v46, %v1194_v45 }
 0x265   :  { %v1227_v58 = vadd.f32 %v1223_v56, %v1180_v16  ;;  %v1225_v63 = vadd.f32 %v1221_v60, %v1178_v48  ;;  %v1228_v31 = vadd.f32 %v1224_v17, %v1181_v12  ;;  %v1242_v37 = vpop.permute.xlu0 %1241  ;;  %v1244_v33 = vpop.permute.xlu1 %1243  ;;  %v1234_v16 = vadd.f32 %v1226_v44, %v1813_v51  ;;  %v1595_v17 = vld [vmem:[%s2244_s3 + $0x41] ss:$8 sm:$0xf] }
 0x266   :  { %v1251_v53 = vsel %vm1146_vm10, %v1242_v37, %v1244_v33  ;;  %v1310_v56 = vrot.slane %v1593_v55, %v1772_v21  ;;  %v1314_v60 = vrot.slane %v1593_v55, %v1783_v26 }
 0x267   :  { %v1233_v59 = vadd.f32 %v1225_v63, %v1807_v49  ;;  %v1276_v2 = vmul.f32 %v1259_v6, %v1251_v53  ;;  %v1235_v43 = vadd.f32 %v1227_v58, %v1809_v50  ;;  %v1236_v23 = vadd.f32 %v1228_v31, %v1815_v52 }
 0x268   :  { %v1318_v52 = vrot.slane %v1593_v55, %v1775_v22  ;;  %v1400_v53 = vrot.slane %v1595_v17, %v1775_v22 }
 0x269   :  { %v1280_v19 = vadd.f32 %v1276_v2, %v1233_v59  ;;  %v1246_v48 = vpop.permute.xlu0 %1245  ;;  %v1248_v12 = vpop.permute.xlu1 %1247 }
 0x26a   :  { %v1250_v18 = vsel %vm1146_vm10, %v1244_v33, %v1246_v48  ;;  %v1249_v49 = vsel %vm1146_vm10, %v1246_v48, %v1248_v12  ;;  %v1252_v14 = vsel %vm1146_vm10, %v1248_v12, %v1242_v37  ;;  %v1388_v12 = vrot.slane %v1595_v17, %v1976_v34 }
 0x26b   :  { %v1277_v20 = vmul.f32 %v1263_v36, %v1250_v18  ;;  %v1278_v46 = vmul.f32 %v1267_v30, %v1249_v49  ;;  %v1279_v51 = vmul.f32 %v1271_v25, %v1252_v14  ;;  %v1396_v18 = vrot.slane %v1595_v17, %v1783_v26 }
 0x26d   :  { %v1281_v44 = vadd.f32 %v1277_v20, %v1234_v16  ;;  %v1282_v39 = vadd.f32 %v1278_v46, %v1235_v43  ;;  %v1283_v0 = vadd.f32 %v1279_v51, %v1236_v23  ;;  %v1289_v40 = vpop.permute.xlu0 %1288  ;;  %v1291_v45 = vpop.permute.xlu1 %1290 }
 0x26e   :  { %v1298_v50 = vsel %vm1063_vm9, %v1289_v40, %v1291_v45 }
 0x26f   :  { %v1323_v15 = vmul.f32 %v1306_v4, %v1298_v50  ;;  %v1392_v4 = vrot.slane %v1595_v17, %v1772_v21 }
 0x271   :  { %v1327_v6 = vadd.f32 %v1323_v15, %v1280_v19  ;;  %v1293_v58 = vpop.permute.xlu0 %1292  ;;  %v1295_v63 = vpop.permute.xlu1 %1294 }
 0x272   :  { %v1297_v31 = vsel %vm1063_vm9, %v1291_v45, %v1293_v58  ;;  %v1296_v37 = vsel %vm1063_vm9, %v1293_v58, %v1295_v63  ;;  %v1299_v33 = vsel %vm1063_vm9, %v1295_v63, %v1289_v40 }
 0x273   :  { %v1324_v36 = vmul.f32 %v1310_v56, %v1297_v31  ;;  %v1325_v55 = vmul.f32 %v1314_v60, %v1296_v37  ;;  %v1326_v59 = vmul.f32 %v1318_v52, %v1299_v33  ;;  %v1362_v2 = vadd.f32 %v1358_v57, %v1327_v6 }
 0x275   :  { %v1328_v30 = vadd.f32 %v1324_v36, %v1281_v44  ;;  %v1329_v11 = vadd.f32 %v1325_v55, %v1282_v39  ;;  %v1330_v25 = vadd.f32 %v1326_v59, %v1283_v0  ;;  %v1371_v19 = vpop.permute.xlu0 %1370  ;;  %v1373_v16 = vpop.permute.xlu1 %1372 }
 0x276   :  { %v1380_v48 = vsel %vm1146_vm10, %v1371_v19, %v1373_v16 }
 0x277   :  { %v1365_v22 = vadd.f32 %v1834_v9, %v1330_v25  ;;  %v1408_v43 = vmul.f32 %v1400_v53, %v1380_v48  ;;  %v1363_v49 = vadd.f32 %v1836_v10, %v1328_v30  ;;  %v1364_v14 = vadd.f32 %v1840_v13, %v1329_v11 }
 0x279   :  { %v1412_v20 = vadd.f32 %v1408_v43, %v1365_v22  ;;  %v1375_v23 = vpop.permute.xlu0 %1374  ;;  %v1377_v46 = vpop.permute.xlu1 %1376 }
 0x27a   :  { %v1379_v51 = vsel %vm1146_vm10, %v1373_v16, %v1375_v23  ;;  %v1378_v34 = vsel %vm1146_vm10, %v1375_v23, %v1377_v46  ;;  %v1381_v21 = vsel %vm1146_vm10, %v1377_v46, %v1371_v19 }
 0x27b   :  { %v1416_v26 = vmax.f32 %v1412_v20, 0.0  ;;  %v1405_v8 = vmul.f32 %v1388_v12, %v1379_v51  ;;  %v1406_v9 = vmul.f32 %v1392_v4, %v1378_v34  ;;  %v1407_v44 = vmul.f32 %v1396_v18, %v1381_v21 }
 0x27d   :  { %1420 = vst [vmem:[%s2245_s4 + $0x58] sm:$0xff] %v1416_v26  ;;  %v1409_v10 = vadd.f32 %v1405_v8, %v1362_v2  ;;  %v1410_v13 = vadd.f32 %v1406_v9, %v1363_v49  ;;  %v1411_v39 = vadd.f32 %v1407_v44, %v1364_v14  ;;  %v1424_v0 = vadd.f32 %v1416_v26, %v797_v5 }
 0x27f   :  { %v1413_v40 = vmax.f32 %v1409_v10, 0.0  ;;  %v1414_v45 = vmax.f32 %v1410_v13, 0.0  ;;  %v1415_v50 = vmax.f32 %v1411_v39, 0.0  ;;  %v1534_v42 = vadd.f32 %v1526_v32, %v1424_v0 }
 0x281   :  { %1417 = vst [vmem:[%s2245_s4 + $0x40] sm:$0xff] %v1413_v40  ;;  %1418 = vst [vmem:[%s2245_s4 + $0x48] sm:$0xff] %v1414_v45  ;;  %v1423_v62 = vadd.f32 %v1415_v50, %v796_v3  ;;  %v1421_v28 = vadd.f32 %v1413_v40, %v794_v47  ;;  %v1422_v32 = vadd.f32 %v1414_v45, %v795_v1 }
 0x282   :  { %1419 = vst [vmem:[%s2245_s4 + $0x50] sm:$0xff] %v1415_v50  ;;  %1538 = vst [vmem:[%s2245_s4 + $0x18] sm:$0xff] %v1534_v42 }
 0x283   :  { %v1533_v5 = vadd.f32 %v1525_v35, %v1423_v62  ;;  %v1531_v15 = vadd.f32 %v1523_v38, %v1421_v28  ;;  %v1532_v7 = vadd.f32 %v1524_v41, %v1422_v32 }
 0x285   :  { %1537 = vst [vmem:[%s2245_s4 + $0x10] sm:$0xff] %v1533_v5  ;;  %1535 = vst [vmem:[%s2245_s4] sm:$0xff] %v1531_v15 }
 0x286   :  { %1536 = vst [vmem:[%s2245_s4 + $0x8] sm:$0xff] %v1532_v7 }

</bundles_post_ra>
